<compile_context>
chip_gen: v5e
topology: v5e:2x2
jax: 0.10.0
libtpu: 0.0.40
codegen_flags: <defaults>
</compile_context>

<pallas_src>
import jax
import jax.numpy as jnp
from jax.experimental import pallas as pl
from jax.experimental.pallas import tpu as pltpu

LANE = 128  # lane width: mu and logstd each get their own 128-lane tile


def _sigmoid(t):
    # exact form used by the pure-JAX reference
    return 1.0 / (1.0 + jnp.exp(-t))


def cvae_kernel(
    # labels / activations
    y_ref, x_ref, eps_ref,
    # encoder params
    w_img_ref, b_img_ref,
    enc_tbl_ref, dec_tbl_ref,
    w_enc_ref, b_enc_ref,
    w_enc2_ref, b_enc2_ref,
    w_heads_ref, b_heads_ref,
    # decoder params
    w_lat_ref, b_lat_ref,
    w_dec_ref, b_dec_ref,
    w_dec2_ref, b_dec2_ref,
    w_out_ref, b_out_ref,
    # outputs
    x_recon_ref, mu_ls_ref,
):
    f32 = jnp.float32
    bf16 = jnp.bfloat16
    Bp = x_ref.shape[0]
    nlbl = enc_tbl_ref.shape[0]

    def dot(a, w_ref):
        # bf16 MXU matmul, f32 accumulation
        return jnp.dot(a.astype(bf16), w_ref[...], preferred_element_type=f32)

    relu = lambda t: jnp.maximum(t, 0.0)

    # ---- label branch: one-hot from int labels -> two tiny K=nlbl dots against the
    # precomputed relu(W_lbl + b_lbl) @ W_cat[H:] tables (no per-row gathers/concats).
    lane_ids = jax.lax.broadcasted_iota(jnp.int32, (Bp, nlbl), 1)
    onehot = (lane_ids == y_ref[...]).astype(f32)                       # (Bp, nlbl)
    enc_lbl = jnp.dot(onehot, enc_tbl_ref[...], preferred_element_type=f32)  # (Bp, H)
    dec_lbl = jnp.dot(onehot, dec_tbl_ref[...], preferred_element_type=f32)  # (Bp, H)

    # ---------------- Encoder ----------------
    h = relu(dot(x_ref[...], w_img_ref) + b_img_ref[...])               # (Bp, H)
    # concat-free Linear(2H -> H): img half via MXU dot, label half via table add
    h = relu(dot(h, w_enc_ref) + enc_lbl + b_enc_ref[...])
    h = relu(dot(h, w_enc2_ref) + b_enc2_ref[...])

    # fused lane-dense mu/logstd head: lanes [0,128)=mu, [128,256)=logstd (zero-padded)
    head = dot(h, w_heads_ref) + b_heads_ref[...]                       # (Bp, 256)
    mu_ls_ref[...] = head.astype(mu_ls_ref.dtype)

    mu = head[:, :LANE]
    logstd = head[:, LANE:]
    # reparametrize: z = mu + eps * exp(0.5 * logstd); padded lanes stay exactly 0
    z = mu + eps_ref[...] * jnp.exp(0.5 * logstd)                       # (Bp, 128)

    # ---------------- Decoder ----------------
    hd = relu(dot(z, w_lat_ref) + b_lat_ref[...])
    hd = relu(dot(hd, w_dec_ref) + dec_lbl + b_dec_ref[...])
    hd = relu(dot(hd, w_dec2_ref) + b_dec2_ref[...])
    logits = dot(hd, w_out_ref) + b_out_ref[...]                        # (Bp, flat_img)
    # sigmoid with the divide routed to the EUP reciprocal slot
    x_recon_ref[...] = pl.reciprocal(
        1.0 + jnp.exp(-logits), approx=True).astype(x_recon_ref.dtype)


def pack_params(p, hidden, latent):
    """Split / fuse / bf16-cast weights and precompute label tables (checkpoint prep)."""
    bf = lambda a: a.astype(jnp.bfloat16)
    f32 = jnp.float32

    # label-contribution tables: row l = relu(W_lbl[l] + b_lbl) @ W_cat[H:]
    # (same bf16 cast points as the per-sample path in the reference)
    def contrib(w_lbl, b_lbl, w_cat_second):
        h = jnp.maximum(w_lbl + b_lbl, 0.0)                              # (label, H) f32
        return jnp.dot(bf(h), bf(w_cat_second), preferred_element_type=f32)

    enc_tbl = contrib(p["w_lbl_enc"], p["b_lbl_enc"], p["w_enc"][hidden:])
    dec_tbl = contrib(p["w_lbl_dec"], p["b_lbl_dec"], p["w_dec"][hidden:])

    # fused, lane-dense mu/logstd head: mu in lanes [0,128), logstd in [128,256)
    w_heads = jnp.zeros((hidden, 2 * LANE), f32)
    w_heads = w_heads.at[:, :latent].set(p["w_mu"])
    w_heads = w_heads.at[:, LANE:LANE + latent].set(p["w_ls"])
    b_heads = jnp.zeros((1, 2 * LANE), f32)
    b_heads = b_heads.at[:, :latent].set(p["b_mu"])
    b_heads = b_heads.at[:, LANE:LANE + latent].set(p["b_ls"])

    # latent->hidden weight padded to 128 input rows so z stays 128-lane dense
    w_lat = jnp.zeros((LANE, hidden), f32).at[:latent].set(p["w_lat"])

    return (
        bf(p["w_img"]), p["b_img"],
        enc_tbl, dec_tbl,                                   # f32 contribution tables
        bf(p["w_enc"][:hidden]), p["b_enc"],
        bf(p["w_enc2"]), p["b_enc2"],
        bf(w_heads), b_heads,
        bf(w_lat), p["b_lat"],
        bf(p["w_dec"][:hidden]), p["b_dec"],
        bf(p["w_dec2"]), p["b_dec2"],
        bf(p["w_out"]), p["b_out"],
    )


def cvae_forward(x_img, y_labels, eps, params, img_size, label_size,
                 latent_size, hidden_size):
    """x_img: (B, C, H, W); y_labels: (B,) int; eps: (B, latent) ~ N(0,1)."""
    B = x_img.shape[0]
    flat_img = img_size[0] * img_size[1] * img_size[2]

    # pad batch: 8 rows (f32 sublanes) for tiny batches, 16 (bf16 packing) beyond that
    mult = 8 if B <= 8 else 16
    Bp = ((B + mult - 1) // mult) * mult
    pad = Bp - B

    # bf16 on the host: halves the HBM->VMEM bytes for the widest activation input
    x_flat = x_img.reshape(B, -1).astype(jnp.bfloat16)       # like x.view(B, -1)
    x_p = jnp.pad(x_flat, ((0, pad), (0, 0)))
    y_p = jnp.pad(y_labels.astype(jnp.int32), (0, pad)).reshape(Bp, 1)   # pad label 0
    eps_p = jnp.zeros((Bp, LANE), jnp.float32).at[:B, :latent_size].set(
        eps.astype(jnp.float32))

    args = (y_p, x_p, eps_p) + pack_params(params, hidden_size, latent_size)

    vmem = pl.BlockSpec(memory_space=pltpu.MemorySpace.VMEM)

    x_recon_flat, mu_ls = pl.pallas_call(
        cvae_kernel,
        out_shape=(
            jax.ShapeDtypeStruct((Bp, flat_img), jnp.float32),
            jax.ShapeDtypeStruct((Bp, 2 * LANE), jnp.float32),
        ),
        in_specs=[vmem] * len(args),
        out_specs=(vmem, vmem),
    )(*args)

    x_recon = x_recon_flat[:B].reshape(B, *img_size)
    mu = mu_ls[:B, :latent_size]
    logstd = mu_ls[:B, LANE:LANE + latent_size]
    return x_recon, mu, logstd


def init_params(key, flat_img, label_size, hidden, latent):
    """Deterministic synthetic params in (in_features, out_features) layout."""
    keys = iter(jax.random.split(key, 22))

    def lin(fan_in, fan_out):
        kw, kb = next(keys), next(keys)
        lim = 1.0 / jnp.sqrt(fan_in)
        w = jax.random.uniform(kw, (fan_in, fan_out), jnp.float32, -lim, lim)
        b = jax.random.uniform(kb, (1, fan_out), jnp.float32, -lim, lim)
        return w, b

    p = {}
    # Encoder
    p["w_img"], p["b_img"] = lin(flat_img, hidden)
    p["w_lbl_enc"], p["b_lbl_enc"] = lin(label_size, hidden)
    p["w_enc"], p["b_enc"] = lin(2 * hidden, hidden)
    p["w_enc2"], p["b_enc2"] = lin(hidden, hidden)
    p["w_mu"], p["b_mu"] = lin(hidden, latent)
    p["w_ls"], p["b_ls"] = lin(hidden, latent)
    # Decoder
    p["w_lat"], p["b_lat"] = lin(latent, hidden)
    p["w_lbl_dec"], p["b_lbl_dec"] = lin(label_size, hidden)
    p["w_dec"], p["b_dec"] = lin(2 * hidden, hidden)
    p["w_dec2"], p["b_dec2"] = lin(hidden, hidden)
    p["w_out"], p["b_out"] = lin(hidden, flat_img)
    return p


def reference_forward(x_img, y_labels, eps, params, img_size, label_size):
    """Pure-JAX reference mirroring the PyTorch CVAE forward (same bf16 cast points)."""
    bf = lambda a: a.astype(jnp.bfloat16)
    relu = lambda t: jnp.maximum(t, 0.0)

    def lin(a, w, b):
        return jnp.dot(bf(a), bf(w), preferred_element_type=jnp.float32) + b

    B = x_img.shape[0]
    x = x_img.reshape(B, -1).astype(jnp.float32)
    y = jax.nn.one_hot(y_labels, label_size, dtype=jnp.float32)

    # Encoder
    hx = relu(lin(x, params["w_img"], params["b_img"]))
    hy = relu(y @ params["w_lbl_enc"] + params["b_lbl_enc"])     # exact f32 row pick
    h = jnp.concatenate([hx, hy], axis=1)
    h = relu(lin(h, params["w_enc"], params["b_enc"]))
    h = relu(lin(h, params["w_enc2"], params["b_enc2"]))
    mu = lin(h, params["w_mu"], params["b_mu"])
    logstd = lin(h, params["w_ls"], params["b_ls"])
    z = mu + eps.astype(jnp.float32) * jnp.exp(0.5 * logstd)

    # Decoder
    hz = relu(lin(z, params["w_lat"], params["b_lat"]))
    hyd = relu(y @ params["w_lbl_dec"] + params["b_lbl_dec"])
    hd = jnp.concatenate([hz, hyd], axis=1)
    hd = relu(lin(hd, params["w_dec"], params["b_dec"]))
    hd = relu(lin(hd, params["w_dec2"], params["b_dec2"]))
    logits = lin(hd, params["w_out"], params["b_out"])
    x_recon = _sigmoid(logits).reshape(B, *img_size)
    return x_recon, mu, logstd


if __name__ == "__main__":
    img_size = (1, 16, 16)       # (C, H, W)
    label_size = 8
    latent_size = 16
    hidden_size = 32
    batch = 2
    flat_img = img_size[0] * img_size[1] * img_size[2]

    key = jax.random.PRNGKey(0)
    k_x, k_y, k_e, k_p = jax.random.split(key, 4)

    x = jax.random.normal(k_x, (batch, *img_size), jnp.float32)       # NCHW
    y = jax.random.randint(k_y, (batch,), 0, label_size, jnp.int32)   # int labels
    eps = jax.random.normal(k_e, (batch, latent_size), jnp.float32)   # reparam noise
    params = init_params(k_p, flat_img, label_size, hidden_size, latent_size)

    x_recon, mu, logstd = cvae_forward(
        x, y, eps, params, img_size, label_size, latent_size, hidden_size)
    x_recon = jax.block_until_ready(x_recon)
    mu = jax.block_until_ready(mu)
    logstd = jax.block_until_ready(logstd)

    xr_ref, mu_ref, ls_ref = reference_forward(x, y, eps, params, img_size, label_size)

    assert jnp.allclose(mu, mu_ref, atol=2e-3, rtol=2e-3)
    assert jnp.allclose(logstd, ls_ref, atol=2e-3, rtol=2e-3)
    assert jnp.allclose(x_recon, xr_ref, atol=2e-3, rtol=2e-3)

    print("KERNEL_OK")
</pallas_src>

<mosaic_0001>
module attributes {stable_mosaic.version = 11 : i64} {
  func.func @cvae_kernel(%arg0: memref<8x1xi32, #tpu.memory_space<vmem>>, %arg1: memref<8x256xbf16, #tpu.memory_space<vmem>>, %arg2: memref<8x128xf32, #tpu.memory_space<vmem>>, %arg3: memref<256x32xbf16, #tpu.memory_space<vmem>>, %arg4: memref<1x32xf32, #tpu.memory_space<vmem>>, %arg5: memref<8x32xf32, #tpu.memory_space<vmem>>, %arg6: memref<8x32xf32, #tpu.memory_space<vmem>>, %arg7: memref<32x32xbf16, #tpu.memory_space<vmem>>, %arg8: memref<1x32xf32, #tpu.memory_space<vmem>>, %arg9: memref<32x32xbf16, #tpu.memory_space<vmem>>, %arg10: memref<1x32xf32, #tpu.memory_space<vmem>>, %arg11: memref<32x256xbf16, #tpu.memory_space<vmem>>, %arg12: memref<1x256xf32, #tpu.memory_space<vmem>>, %arg13: memref<128x32xbf16, #tpu.memory_space<vmem>>, %arg14: memref<1x32xf32, #tpu.memory_space<vmem>>, %arg15: memref<32x32xbf16, #tpu.memory_space<vmem>>, %arg16: memref<1x32xf32, #tpu.memory_space<vmem>>, %arg17: memref<32x32xbf16, #tpu.memory_space<vmem>>, %arg18: memref<1x32xf32, #tpu.memory_space<vmem>>, %arg19: memref<32x256xbf16, #tpu.memory_space<vmem>>, %arg20: memref<1x256xf32, #tpu.memory_space<vmem>>, %arg21: memref<8x256xf32, #tpu.memory_space<vmem>>, %arg22: memref<8x256xf32, #tpu.memory_space<vmem>>) attributes {dimension_semantics = [], scalar_prefetch = 0 : i64, scratch_operands = 0 : i64, tpu.core_type = #tpu.core_type<tc>} {
    %0 = tpu.iota {dimensions = array<i32: 1>} : vector<8x8xi32>
    %c0 = arith.constant 0 : index
    %c0_0 = arith.constant 0 : index
    %1 = vector.load %arg0[%c0, %c0_0] : memref<8x1xi32, #tpu.memory_space<vmem>>, vector<8x1xi32>
    %2 = vector.broadcast %1 : vector<8x1xi32> to vector<8x8xi32>
    %3 = arith.cmpi eq, %0, %2 : vector<8x8xi32>
    %4 = arith.extui %3 : vector<8x8xi1> to vector<8x8xi32>
    %5 = arith.sitofp %4 : vector<8x8xi32> to vector<8x8xf32>
    %c0_1 = arith.constant 0 : index
    %c0_2 = arith.constant 0 : index
    %6 = vector.load %arg5[%c0_1, %c0_2] : memref<8x32xf32, #tpu.memory_space<vmem>>, vector<8x32xf32>
    %cst = arith.constant dense<0.000000e+00> : vector<8x32xf32>
    %7 = tpu.matmul %5, %6, %cst {dimension_numbers = #tpu.dot_dimension_numbers<[1], [0], [0], [1], [0, 0, 1, 1], [], []>} : vector<8x8xf32>, vector<8x32xf32>, vector<8x32xf32> -> vector<8x32xf32>
    %c0_3 = arith.constant 0 : index
    %c0_4 = arith.constant 0 : index
    %8 = vector.load %arg6[%c0_3, %c0_4] : memref<8x32xf32, #tpu.memory_space<vmem>>, vector<8x32xf32>
    %cst_5 = arith.constant dense<0.000000e+00> : vector<8x32xf32>
    %9 = tpu.matmul %5, %8, %cst_5 {dimension_numbers = #tpu.dot_dimension_numbers<[1], [0], [0], [1], [0, 0, 1, 1], [], []>} : vector<8x8xf32>, vector<8x32xf32>, vector<8x32xf32> -> vector<8x32xf32>
    %c0_6 = arith.constant 0 : index
    %c0_7 = arith.constant 0 : index
    %10 = vector.load %arg1[%c0_6, %c0_7] : memref<8x256xbf16, #tpu.memory_space<vmem>>, vector<8x256xbf16>
    %c0_8 = arith.constant 0 : index
    %c0_9 = arith.constant 0 : index
    %11 = vector.load %arg3[%c0_8, %c0_9] : memref<256x32xbf16, #tpu.memory_space<vmem>>, vector<256x32xbf16>
    %cst_10 = arith.constant dense<0.000000e+00> : vector<8x32xf32>
    %12 = tpu.matmul %10, %11, %cst_10 {dimension_numbers = #tpu.dot_dimension_numbers<[1], [0], [0], [1], [0, 0, 1, 1], [], []>} : vector<8x256xbf16>, vector<256x32xbf16>, vector<8x32xf32> -> vector<8x32xf32>
    %c0_11 = arith.constant 0 : index
    %c0_12 = arith.constant 0 : index
    %13 = vector.load %arg4[%c0_11, %c0_12] : memref<1x32xf32, #tpu.memory_space<vmem>>, vector<1x32xf32>
    %14 = vector.broadcast %13 : vector<1x32xf32> to vector<8x32xf32>
    %15 = arith.addf %12, %14 : vector<8x32xf32>
    %cst_13 = arith.constant 0.000000e+00 : f32
    %16 = vector.broadcast %cst_13 : f32 to vector<8x32xf32>
    %17 = arith.maximumf %15, %16 : vector<8x32xf32>
    %18 = arith.truncf %17 : vector<8x32xf32> to vector<8x32xbf16>
    %c0_14 = arith.constant 0 : index
    %c0_15 = arith.constant 0 : index
    %19 = vector.load %arg7[%c0_14, %c0_15] : memref<32x32xbf16, #tpu.memory_space<vmem>>, vector<32x32xbf16>
    %cst_16 = arith.constant dense<0.000000e+00> : vector<8x32xf32>
    %20 = tpu.matmul %18, %19, %cst_16 {dimension_numbers = #tpu.dot_dimension_numbers<[1], [0], [0], [1], [0, 0, 1, 1], [], []>} : vector<8x32xbf16>, vector<32x32xbf16>, vector<8x32xf32> -> vector<8x32xf32>
    %21 = arith.addf %20, %7 : vector<8x32xf32>
    %c0_17 = arith.constant 0 : index
    %c0_18 = arith.constant 0 : index
    %22 = vector.load %arg8[%c0_17, %c0_18] : memref<1x32xf32, #tpu.memory_space<vmem>>, vector<1x32xf32>
    %23 = vector.broadcast %22 : vector<1x32xf32> to vector<8x32xf32>
    %24 = arith.addf %21, %23 : vector<8x32xf32>
    %cst_19 = arith.constant 0.000000e+00 : f32
    %25 = vector.broadcast %cst_19 : f32 to vector<8x32xf32>
    %26 = arith.maximumf %24, %25 : vector<8x32xf32>
    %27 = arith.truncf %26 : vector<8x32xf32> to vector<8x32xbf16>
    %c0_20 = arith.constant 0 : index
    %c0_21 = arith.constant 0 : index
    %28 = vector.load %arg9[%c0_20, %c0_21] : memref<32x32xbf16, #tpu.memory_space<vmem>>, vector<32x32xbf16>
    %cst_22 = arith.constant dense<0.000000e+00> : vector<8x32xf32>
    %29 = tpu.matmul %27, %28, %cst_22 {dimension_numbers = #tpu.dot_dimension_numbers<[1], [0], [0], [1], [0, 0, 1, 1], [], []>} : vector<8x32xbf16>, vector<32x32xbf16>, vector<8x32xf32> -> vector<8x32xf32>
    %c0_23 = arith.constant 0 : index
    %c0_24 = arith.constant 0 : index
    %30 = vector.load %arg10[%c0_23, %c0_24] : memref<1x32xf32, #tpu.memory_space<vmem>>, vector<1x32xf32>
    %31 = vector.broadcast %30 : vector<1x32xf32> to vector<8x32xf32>
    %32 = arith.addf %29, %31 : vector<8x32xf32>
    %cst_25 = arith.constant 0.000000e+00 : f32
    %33 = vector.broadcast %cst_25 : f32 to vector<8x32xf32>
    %34 = arith.maximumf %32, %33 : vector<8x32xf32>
    %35 = arith.truncf %34 : vector<8x32xf32> to vector<8x32xbf16>
    %c0_26 = arith.constant 0 : index
    %c0_27 = arith.constant 0 : index
    %36 = vector.load %arg11[%c0_26, %c0_27] : memref<32x256xbf16, #tpu.memory_space<vmem>>, vector<32x256xbf16>
    %cst_28 = arith.constant dense<0.000000e+00> : vector<8x256xf32>
    %37 = tpu.matmul %35, %36, %cst_28 {dimension_numbers = #tpu.dot_dimension_numbers<[1], [0], [0], [1], [0, 0, 1, 1], [], []>} : vector<8x32xbf16>, vector<32x256xbf16>, vector<8x256xf32> -> vector<8x256xf32>
    %c0_29 = arith.constant 0 : index
    %c0_30 = arith.constant 0 : index
    %38 = vector.load %arg12[%c0_29, %c0_30] : memref<1x256xf32, #tpu.memory_space<vmem>>, vector<1x256xf32>
    %39 = vector.broadcast %38 : vector<1x256xf32> to vector<8x256xf32>
    %40 = arith.addf %37, %39 : vector<8x256xf32>
    %c0_31 = arith.constant 0 : index
    %c0_32 = arith.constant 0 : index
    %41 = vector.load %arg22[%c0_31, %c0_32] : memref<8x256xf32, #tpu.memory_space<vmem>>, vector<8x256xf32>
    tpu.vector_store %arg22[%c0_31, %c0_32], %40 {strides = array<i32>} : memref<8x256xf32, #tpu.memory_space<vmem>>, vector<8x256xf32>,
    %42 = vector.extract_strided_slice %40 {offsets = [0, 0], sizes = [8, 128], strides = [1, 1]} : vector<8x256xf32> to vector<8x128xf32>
    %43 = vector.extract_strided_slice %40 {offsets = [0, 128], sizes = [8, 128], strides = [1, 1]} : vector<8x256xf32> to vector<8x128xf32>
    %c0_33 = arith.constant 0 : index
    %c0_34 = arith.constant 0 : index
    %44 = vector.load %arg2[%c0_33, %c0_34] : memref<8x128xf32, #tpu.memory_space<vmem>>, vector<8x128xf32>
    %cst_35 = arith.constant 5.000000e-01 : f32
    %45 = vector.broadcast %cst_35 : f32 to vector<8x128xf32>
    %46 = arith.mulf %45, %43 : vector<8x128xf32>
    %47 = math.exp %46 : vector<8x128xf32>
    %48 = arith.mulf %44, %47 : vector<8x128xf32>
    %49 = arith.addf %42, %48 : vector<8x128xf32>
    %50 = arith.truncf %49 : vector<8x128xf32> to vector<8x128xbf16>
    %c0_36 = arith.constant 0 : index
    %c0_37 = arith.constant 0 : index
    %51 = vector.load %arg13[%c0_36, %c0_37] : memref<128x32xbf16, #tpu.memory_space<vmem>>, vector<128x32xbf16>
    %cst_38 = arith.constant dense<0.000000e+00> : vector<8x32xf32>
    %52 = tpu.matmul %50, %51, %cst_38 {dimension_numbers = #tpu.dot_dimension_numbers<[1], [0], [0], [1], [0, 0, 1, 1], [], []>} : vector<8x128xbf16>, vector<128x32xbf16>, vector<8x32xf32> -> vector<8x32xf32>
    %c0_39 = arith.constant 0 : index
    %c0_40 = arith.constant 0 : index
    %53 = vector.load %arg14[%c0_39, %c0_40] : memref<1x32xf32, #tpu.memory_space<vmem>>, vector<1x32xf32>
    %54 = vector.broadcast %53 : vector<1x32xf32> to vector<8x32xf32>
    %55 = arith.addf %52, %54 : vector<8x32xf32>
    %cst_41 = arith.constant 0.000000e+00 : f32
    %56 = vector.broadcast %cst_41 : f32 to vector<8x32xf32>
    %57 = arith.maximumf %55, %56 : vector<8x32xf32>
    %58 = arith.truncf %57 : vector<8x32xf32> to vector<8x32xbf16>
    %c0_42 = arith.constant 0 : index
    %c0_43 = arith.constant 0 : index
    %59 = vector.load %arg15[%c0_42, %c0_43] : memref<32x32xbf16, #tpu.memory_space<vmem>>, vector<32x32xbf16>
    %cst_44 = arith.constant dense<0.000000e+00> : vector<8x32xf32>
    %60 = tpu.matmul %58, %59, %cst_44 {dimension_numbers = #tpu.dot_dimension_numbers<[1], [0], [0], [1], [0, 0, 1, 1], [], []>} : vector<8x32xbf16>, vector<32x32xbf16>, vector<8x32xf32> -> vector<8x32xf32>
    %61 = arith.addf %60, %9 : vector<8x32xf32>
    %c0_45 = arith.constant 0 : index
    %c0_46 = arith.constant 0 : index
    %62 = vector.load %arg16[%c0_45, %c0_46] : memref<1x32xf32, #tpu.memory_space<vmem>>, vector<1x32xf32>
    %63 = vector.broadcast %62 : vector<1x32xf32> to vector<8x32xf32>
    %64 = arith.addf %61, %63 : vector<8x32xf32>
    %cst_47 = arith.constant 0.000000e+00 : f32
    %65 = vector.broadcast %cst_47 : f32 to vector<8x32xf32>
    %66 = arith.maximumf %64, %65 : vector<8x32xf32>
    %67 = arith.truncf %66 : vector<8x32xf32> to vector<8x32xbf16>
    %c0_48 = arith.constant 0 : index
    %c0_49 = arith.constant 0 : index
    %68 = vector.load %arg17[%c0_48, %c0_49] : memref<32x32xbf16, #tpu.memory_space<vmem>>, vector<32x32xbf16>
    %cst_50 = arith.constant dense<0.000000e+00> : vector<8x32xf32>
    %69 = tpu.matmul %67, %68, %cst_50 {dimension_numbers = #tpu.dot_dimension_numbers<[1], [0], [0], [1], [0, 0, 1, 1], [], []>} : vector<8x32xbf16>, vector<32x32xbf16>, vector<8x32xf32> -> vector<8x32xf32>
    %c0_51 = arith.constant 0 : index
    %c0_52 = arith.constant 0 : index
    %70 = vector.load %arg18[%c0_51, %c0_52] : memref<1x32xf32, #tpu.memory_space<vmem>>, vector<1x32xf32>
    %71 = vector.broadcast %70 : vector<1x32xf32> to vector<8x32xf32>
    %72 = arith.addf %69, %71 : vector<8x32xf32>
    %cst_53 = arith.constant 0.000000e+00 : f32
    %73 = vector.broadcast %cst_53 : f32 to vector<8x32xf32>
    %74 = arith.maximumf %72, %73 : vector<8x32xf32>
    %75 = arith.truncf %74 : vector<8x32xf32> to vector<8x32xbf16>
    %c0_54 = arith.constant 0 : index
    %c0_55 = arith.constant 0 : index
    %76 = vector.load %arg19[%c0_54, %c0_55] : memref<32x256xbf16, #tpu.memory_space<vmem>>, vector<32x256xbf16>
    %cst_56 = arith.constant dense<0.000000e+00> : vector<8x256xf32>
    %77 = tpu.matmul %75, %76, %cst_56 {dimension_numbers = #tpu.dot_dimension_numbers<[1], [0], [0], [1], [0, 0, 1, 1], [], []>} : vector<8x32xbf16>, vector<32x256xbf16>, vector<8x256xf32> -> vector<8x256xf32>
    %c0_57 = arith.constant 0 : index
    %c0_58 = arith.constant 0 : index
    %78 = vector.load %arg20[%c0_57, %c0_58] : memref<1x256xf32, #tpu.memory_space<vmem>>, vector<1x256xf32>
    %79 = vector.broadcast %78 : vector<1x256xf32> to vector<8x256xf32>
    %80 = arith.addf %77, %79 : vector<8x256xf32>
    %cst_59 = arith.constant 0.000000e+00 : f32
    %81 = vector.broadcast %cst_59 : f32 to vector<8x256xf32>
    %82 = arith.subf %81, %80 : vector<8x256xf32>
    %83 = math.exp %82 : vector<8x256xf32>
    %cst_60 = arith.constant 1.000000e+00 : f32
    %84 = vector.broadcast %cst_60 : f32 to vector<8x256xf32>
    %85 = arith.addf %84, %83 : vector<8x256xf32>
    %86 = tpu.reciprocal %85 {approx = true} : vector<8x256xf32> -> vector<8x256xf32>
    %c0_61 = arith.constant 0 : index
    %c0_62 = arith.constant 0 : index
    %87 = vector.load %arg21[%c0_61, %c0_62] : memref<8x256xf32, #tpu.memory_space<vmem>>, vector<8x256xf32>
    tpu.vector_store %arg21[%c0_61, %c0_62], %86 {strides = array<i32>} : memref<8x256xf32, #tpu.memory_space<vmem>>, vector<8x256xf32>,
    return
  }
}

</mosaic_0001>

<bundles_post_ra>
// kernel: tpu_custom_call.1
= control target key start
LH: loop header
LB: loop body
LE: loop exit
PB: predicated region body
PF: predicated region fallthrough
CT: control target
= control target key end

     0   :  { %s1308_s0 = inlined_call_operand.vmem [shape: s32[8,1], index: 0, kind: input, shape index: {}]   ;;  %s1309_s1 = inlined_call_operand.vmem [shape: bf16[8,256], index: 1, kind: input, shape index: {}]   ;;  %s1310_s2 = inlined_call_operand.vmem [shape: f32[8,128], index: 2, kind: input, shape index: {}]   ;;  %s1311_s3 = inlined_call_operand.vmem [shape: bf16[256,32], index: 3, kind: input, shape index: {}]   ;;  %s1312_s4 = inlined_call_operand.vmem [shape: f32[1,32], index: 4, kind: input, shape index: {}]   ;;  %s1313_s5 = inlined_call_operand.vmem [shape: f32[8,32], index: 5, kind: input, shape index: {}]   ;;  %s1314_s6 = inlined_call_operand.vmem [shape: f32[8,32], index: 6, kind: input, shape index: {}]   ;;  %s1315_s7 = inlined_call_operand.vmem [shape: bf16[32,32], index: 7, kind: input, shape index: {}]   ;;  %s1316_s8 = inlined_call_operand.vmem [shape: f32[1,32], index: 8, kind: input, shape index: {}]   ;;  %s1317_s9 = inlined_call_operand.vmem [shape: bf16[32,32], index: 9, kind: input, shape index: {}]   ;;  %s1318_s10 = inlined_call_operand.vmem [shape: f32[1,32], index: 10, kind: input, shape index: {}]   ;;  %s1319_s11 = inlined_call_operand.vmem [shape: bf16[32,256], index: 11, kind: input, shape index: {}]   ;;  %s1320_s12 = inlined_call_operand.vmem [shape: f32[1,256], index: 12, kind: input, shape index: {}]   ;;  %s1321_s13 = inlined_call_operand.vmem [shape: bf16[128,32], index: 13, kind: input, shape index: {}]   ;;  %s1322_s14 = inlined_call_operand.vmem [shape: f32[1,32], index: 14, kind: input, shape index: {}]   ;;  %s1323_s15 = inlined_call_operand.vmem [shape: bf16[32,32], index: 15, kind: input, shape index: {}]   ;;  %s1324_s16 = inlined_call_operand.vmem [shape: f32[1,32], index: 16, kind: input, shape index: {}]   ;;  %s1325_s17 = inlined_call_operand.vmem [shape: bf16[32,32], index: 17, kind: input, shape index: {}]   ;;  %s1326_s18 = inlined_call_operand.vmem [shape: f32[1,32], index: 18, kind: input, shape index: {}]   ;;  %s1327_s19 = inlined_call_operand.vmem [shape: bf16[32,256], index: 19, kind: input, shape index: {}]   ;;  %s1328_s20 = inlined_call_operand.vmem [shape: f32[1,256], index: 20, kind: input, shape index: {}]   ;;  %s1329_s21 = inlined_call_operand.hbm [shape: f32[8,256], index: 21, kind: output, shape index: {0}]   ;;  %s1330_s22 = inlined_call_operand.hbm [shape: f32[8,256], index: 22, kind: output, shape index: {1}]  }
   0x1   :  { %1332 = sst [smem:[#allocation8_spill]] %s1308_s0 }
   0x2   :  { %1333 = sst [smem:[#allocation9_spill]] %s1309_s1 }
   0x3   :  { %1334 = sst [smem:[#allocation10_spill]] %s1310_s2 }
   0x4   :  { %1335 = sst [smem:[#allocation11_spill]] %s1311_s3 }
   0x5   :  { %1336 = sst [smem:[#allocation12_spill]] %s1312_s4 }
   0x6   :  { %1337 = sst [smem:[#allocation13_spill]] %s1313_s5 }
   0x7   :  { %1338 = sst [smem:[#allocation14_spill]] %s1314_s6 }
   0x8   :  { %28 = vsyncpa [#allocation3], 0  ;;  %s1339_s29 = sld [smem:[#allocation8_spill]]  ;;  %v989_v3 = vmov 0  }
   0x9   :  { %s1340_s0 = sld [smem:[#allocation13_spill]]  ;;  %920 = vset.pattern.permute.xlu0 %v989_v3 }
   0xa   :  { %s1341_s5 = sld [smem:[#allocation14_spill]] }
   0xb   :  { %s1342_s25 = sld [smem:[#allocation11_spill]] }
   0xe   :  { %v75_v0 = vld [vmem:[%s1339_s29] sm:$0xff] }
   0xf   :  { %v82_v1 = vld [vmem:[%s1340_s0] sm:$0xff]  ;;  %77 = vperm.xlu0 %920, %v75_v0  }
  0x10   :  { %v107_v2 = vld [vmem:[%s1341_s5] sm:$0xff]  ;;  %102 = vmatpush.msra.mxu2 %v82_v1 }
  0x11   :  { %v883_v4 = vld [vmem:[%s1342_s25 + $0x38] sm:$0xff]  ;;  %123 = vmatpush.msra.mxu3 %v107_v2  ;;  %v882_v6 = vld [vmem:[%s1342_s25 + $0x30] sm:$0xff]  ;;  %v881_v8 = vld [vmem:[%s1342_s25 + $0x28] sm:$0xff] }
  0x12   :  { %v891_v5 = vld [vmem:[%s1342_s25 + $0x78] sm:$0xff]  ;;  %268 = vmatpush.bf16.msrb.mxu2 %v883_v4  ;;  %v890_v7 = vld [vmem:[%s1342_s25 + $0x70] sm:$0xff]  ;;  %v889_v9 = vld [vmem:[%s1342_s25 + $0x68] sm:$0xff] }
  0x13   :  { %281 = vmatpush.bf16.msrb.mxu3 %v891_v5 }
  0x16   :  { %269 = vmatpush.bf16.msrb.mxu2 %v882_v6 }
  0x17   :  { %282 = vmatpush.bf16.msrb.mxu3 %v890_v7 }
  0x18   :  { %29 = vsyncpa [#allocation5], 0  ;;  %v880_v10 = vld [vmem:[%s1342_s25 + $0x20] sm:$0xff]  ;;  %v879_v12 = vld [vmem:[%s1342_s25 + $0x18] sm:$0xff]  ;;  %v73_v20 = vlaneseq  ;;  %vm83_vm0 = vcmask 64512   ;;  %s1343_s28 = sld [smem:[#allocation9_spill]] }
  0x19   :  { %v888_v11 = vld [vmem:[%s1342_s25 + $0x60] sm:$0xff]  ;;  %v887_v13 = vld [vmem:[%s1342_s25 + $0x58] sm:$0xff]  ;;  %v878_v14 = vld [vmem:[%s1342_s25 + $0x10] sm:$0xff]  ;;  %v990_v24 = vmov 0.0   ;;  %s1344_s1 = sld [smem:[#allocation12_spill]]  ;;  %vm312_vm2 = vcmask 261120  }
  0x1a   :  { %270 = vmatpush.bf16.msrb.mxu2 %v881_v8  ;;  %v886_v15 = vld [vmem:[%s1342_s25 + $0x50] sm:$0xff]  ;;  %v877_v16 = vld [vmem:[%s1342_s25 + $0x8] sm:$0xff]  ;;  %v876_v18 = vld [vmem:[%s1342_s25] sm:$0xff]  ;;  %v74_v21 = vand.u32 127, %v73_v20  ;;  %s680_s0 = sshll.u32 %s1329_s21, 4  ;;  %s681_s0 = int_to_ptr.hbm [resolvable:$true] %s680_s0 }
  0x1b   :  { %283 = vmatpush.bf16.msrb.mxu3 %v889_v9  ;;  %v885_v17 = vld [vmem:[%s1342_s25 + $0x48] sm:$0xff]  ;;  %v884_v19 = vld [vmem:[%s1342_s25 + $0x40] sm:$0xff]  ;;  %v898_v45 = vld [vmem:[%s1319_s11 + $0x14] sm:$0xf] }
  0x1c   :  { %v893_v30 = vld [vmem:[%s1315_s7 + $0x8] sm:$0xff]  ;;  %v892_v31 = vld [vmem:[%s1315_s7] sm:$0xff]  ;;  %v802_v46 = vld [vmem:[%s1319_s11 + $0x18] sm:$0xf0] }
  0x1d   :  { %322 = vmatpush.bf16.msra.mxu0 %v893_v30  ;;  %v895_v43 = vld [vmem:[%s1317_s9 + $0x8] sm:$0xff]  ;;  %v894_v44 = vld [vmem:[%s1317_s9] sm:$0xff]  ;;  %v805_v48 = vor.u32 %v898_v45, %v802_v46  ;;  %v800_v58 = vld [vmem:[%s1319_s11 + $0x10] sm:$0xf] }
  0x1e   :  { %271 = vmatpush.bf16.msrb.mxu2 %v880_v10  ;;  %v128_v23 = vld [vmem:[%s1343_s28] sm:$0xff]  ;;  %365 = vmatpush.bf16.msra.mxu1 %v895_v43  ;;  %v794_v49 = vld [vmem:[%s1319_s11 + $0x8] sm:$0xf0]  ;;  %v899_v59 = vld [vmem:[%s1319_s11 + $0x14] sm:$0xf0]  ;;  %s1345_s28 = sld [smem:[#allocation10_spill]] }
  0x1f   :  { %284 = vmatpush.bf16.msrb.mxu3 %v888_v11  ;;  %v166_v26 = vunpack.c.l.b16 %v128_v23  ;;  %v167_v27 = vunpack.c.h.b16 %v128_v23  ;;  %v921_v34 = vld [vmem:[%s1344_s1] ss:$0 sm:$0xff]  ;;  %v896_v47 = vld [vmem:[%s1319_s11 + $0x4] sm:$0xf]  ;;  %v801_v60 = vor.u32 %v899_v59, %v800_v58  ;;  %v897_v62 = vld [vmem:[%s1319_s11 + $0x4] sm:$0xf0] }
  0x20   :  { %v797_v50 = vor.u32 %v896_v47, %v794_v49  ;;  %v922_v51 = vld [vmem:[%s1316_s8] ss:$0 sm:$0xff]  ;;  %v907_v0 = vld [vmem:[%s1321_s13 + $0x38] sm:$0xff]  ;;  %v906_v1 = vld [vmem:[%s1321_s13 + $0x30] sm:$0xff] }
  0x21   :  { %v168_v28 = vpack.c.b16 %v166_v26, %v166_v26  ;;  %v169_v29 = vpack.c.b16 %v167_v27, %v167_v27  ;;  %323 = vmatpush.bf16.msra.mxu0 %v892_v31  ;;  %v792_v61 = vld [vmem:[%s1319_s11] sm:$0xf]  ;;  %v905_v2 = vld [vmem:[%s1321_s13 + $0x28] sm:$0xff]  ;;  %v903_v10 = vld [vmem:[%s1321_s13 + $0x18] sm:$0xff] }
  0x22   :  { %272 = vmatpush.bf16.msrb.mxu2 %v879_v12  ;;  %366 = vmatpush.bf16.msra.mxu1 %v894_v44  ;;  %v793_v63 = vor.u32 %v897_v62, %v792_v61  ;;  %v923_v3 = vld [vmem:[%s1318_s10] ss:$0 sm:$0xff]  ;;  %v902_v11 = vld [vmem:[%s1321_s13 + $0x10] sm:$0xff]  ;;  %v901_v12 = vld [vmem:[%s1321_s13 + $0x8] sm:$0xff] }
  0x23   :  { %285 = vmatpush.bf16.msrb.mxu3 %v887_v13  ;;  %v904_v9 = vld [vmem:[%s1321_s13 + $0x20] sm:$0xff]  ;;  %v914_v43 = vld [vmem:[%s1327_s19 + $0x14] sm:$0xf]  ;;  %v870_v45 = vld [vmem:[%s1327_s19 + $0x18] sm:$0xf0] }
  0x24   :  { %v900_v13 = vld [vmem:[%s1321_s13] sm:$0xff]  ;;  %v913_v47 = vld [vmem:[%s1327_s19 + $0x4] sm:$0xf0]  ;;  %v862_v58 = vld [vmem:[%s1327_s19 + $0x8] sm:$0xf0] }
  0x25   :  { %413 = vmatpush.bf16.msrb.mxu0 %v801_v60  ;;  %v435_v27 = vld [vmem:[%s1345_s28] sm:$0xff] }
  0x26   :  { %273 = vmatpush.bf16.msrb.mxu2 %v878_v14  ;;  %426 = vmatpush.bf16.msrb.mxu1 %v805_v48  ;;  %v909_v14 = vld [vmem:[%s1323_s15 + $0x8] sm:$0xff]  ;;  %v860_v46 = vld [vmem:[%s1327_s19] sm:$0xf]  ;;  %v873_v48 = vor.u32 %v914_v43, %v870_v45 }
  0x27   :  { %286 = vmatpush.bf16.msrb.mxu3 %v886_v15  ;;  %v908_v15 = vld [vmem:[%s1323_s15] sm:$0xff]  ;;  %v861_v49 = vor.u32 %v913_v47, %v860_v46 }
  0x29   :  { %414 = vmatpush.bf16.msrb.mxu0 %v793_v63 }
  0x2a   :  { %274 = vmatpush.bf16.msrb.mxu2 %v877_v16  ;;  %427 = vmatpush.bf16.msrb.mxu1 %v797_v50  ;;  %v378_v16 = vld [vmem:[%s1320_s12] sm:$0x3]  ;;  %s991_s12 = smov [#allocation4]  }
  0x2b   :  { %287 = vmatpush.bf16.msrb.mxu3 %v885_v17  ;;  %v380_v17 = vperm.slane %v378_v16, 0  ;;  %v925_v50 = vld [vmem:[%s1324_s16] ss:$0 sm:$0xff]  ;;  %s689_s25 = sshll.u32 %s991_s12, 4  ;;  %s690_s25 = int_to_ptr.vmem [resolvable:$true] %s689_s25 }
  0x2e   :  { %275 = vmatpush.bf16.msrb.mxu2 %v876_v18  ;;  %v381_v18 = vperm.slane %v378_v16, 1 }
  0x2f   :  { %288 = vmatpush.bf16.msrb.mxu3 %v884_v19 }
  0x81   :  { %v78_v22 = vpop.permute.xlu0 %77 }
  0x82   :  { %vm79_vm1 = vcmp.eq.s32.totalorder %v74_v21, %v78_v22 }
  0x83   :  { %v705_v25 = vsel %vm79_vm1, 1.0, %v990_v24 }
  0x84   :  { %706 = vmatmul.msk.f32.vlgmr.msra.gmra.mxu2 %vm83_vm0, %v705_v25  ;;  %707 = vmatmul.msk.f32.vlgmr.msra.gmra.mxu3 %vm83_vm0, %v705_v25 }
  0x8c   :  { %276 = vmatmul.bf16.vlgmr.msrb.gmra.mxu2 %v168_v28  ;;  %289 = vmatmul.bf16.vlgmr.msrb.gmra.mxu3 %v169_v29 }
 0x107   :  { %v104_v32 = vpop.f32.mrf.mxu2  ;;  %v1174_v33 = vpop.f32.mrf.mxu3 }
 0x10f   :  { %v277_v35 = vpop.f32.mrf.mxu2  ;;  %v290_v36 = vpop.f32.mrf.mxu3 }
 0x110   :  { %v278_v37 = vadd.f32 %v921_v34, %v277_v35  ;;  %v924_v34 = vld [vmem:[%s1322_s14] ss:$0 sm:$0xff] }
 0x112   :  { %v291_v38 = vadd.f32 %v290_v36, %v278_v37 }
 0x114   :  { %v294_v39 = vmax.f32 %v291_v38, 0.0 }
 0x116   :  { %v295_v40 = vpack.c.bf16 %v294_v39, %v294_v39 }
 0x117   :  { %v279_v41 = vpop.f32.mrf.mxu2  ;;  %v292_v42 = vpop.f32.mrf.mxu3 }
 0x118   :  { %780 = vmatmul.msk.bf16.vlgmr.msra.gmra.mxu0 %vm312_vm2, %v295_v40  ;;  %v910_v40 = vld [vmem:[%s1325_s17] sm:$0xff]  ;;  %v868_v41 = vld [vmem:[%s1327_s19 + $0x10] sm:$0xf]  ;;  %v915_v42 = vld [vmem:[%s1327_s19 + $0x14] sm:$0xf0] }
 0x119   :  { %510 = vmatpush.bf16.msra.mxu0 %v907_v0  ;;  %v869_v44 = vor.u32 %v915_v42, %v868_v41 }
 0x11b   :  { %641 = vmatpush.bf16.msra.mxu3 %v869_v44 }
 0x11d   :  { %511 = vmatpush.bf16.msra.mxu0 %v906_v1  ;;  %v606_v1 = vld [vmem:[%s1328_s20] sm:$0x3]  ;;  %s992_s20 = smov [#allocation2]  }
 0x11f   :  { %642 = vmatpush.bf16.msra.mxu3 %v861_v49 }
 0x121   :  { %512 = vmatpush.bf16.msra.mxu0 %v905_v2  ;;  %v609_v2 = vperm.slane %v606_v1, 1 }
 0x125   :  { %513 = vmatpush.bf16.msra.mxu0 %v904_v9 }
 0x129   :  { %514 = vmatpush.bf16.msra.mxu0 %v903_v10 }
 0x12d   :  { %515 = vmatpush.bf16.msra.mxu0 %v902_v11 }
 0x131   :  { %516 = vmatpush.bf16.msra.mxu0 %v901_v12 }
 0x135   :  { %517 = vmatpush.bf16.msra.mxu0 %v900_v13 }
 0x195   :  { %v325_v52 = vpop.f32.mrf.mxu0 }
 0x196   :  { %v326_v53 = vadd.f32 %v325_v52, %v104_v32  ;;  %v911_v32 = vld [vmem:[%s1325_s17 + $0x8] sm:$0xff] }
 0x197   :  { %593 = vmatpush.bf16.msra.mxu2 %v911_v32 }
 0x198   :  { %v333_v54 = vadd.f32 %v922_v51, %v326_v53 }
 0x19a   :  { %v334_v55 = vmax.f32 %v333_v54, 0.0 }
 0x19b   :  { %594 = vmatpush.bf16.msra.mxu2 %v910_v40 }
 0x19c   :  { %v335_v56 = vpack.c.bf16 %v334_v55, %v334_v55 }
 0x19d   :  { %v327_v57 = vpop.f32.mrf.mxu0 }
 0x19e   :  { %789 = vmatmul.msk.bf16.vlgmr.msra.gmra.mxu1 %vm312_vm2, %v335_v56  ;;  %v912_v57 = vld [vmem:[%s1327_s19 + $0x4] sm:$0xf]  ;;  %s691_s19 = sshll.u32 %s1330_s22, 4  ;;  %s678_s22 = sshll.u32 %s992_s20, 4  ;;  %s692_s19 = int_to_ptr.hbm [resolvable:$true] %s691_s19  ;;  %s679_s22 = int_to_ptr.vmem [resolvable:$true] %s678_s22 }
 0x19f   :  { %550 = vmatpush.bf16.msra.mxu1 %v909_v14  ;;  %v865_v59 = vor.u32 %v912_v57, %v862_v58 }
 0x1a3   :  { %551 = vmatpush.bf16.msra.mxu1 %v908_v15 }
 0x21b   :  { %v368_v4 = vpop.f32.mrf.mxu1 }
 0x21c   :  { %v369_v5 = vadd.f32 %v923_v3, %v368_v4 }
 0x21e   :  { %v372_v6 = vmax.f32 %v369_v5, 0.0 }
 0x220   :  { %v373_v7 = vpack.c.bf16 %v372_v6, %v372_v6  ;;  %v608_v6 = vperm.slane %v606_v1, 0 }
 0x222   :  { %806 = vmatmul.msk.bf16.vlgmr.msrb.gmra.mxu0 %vm312_vm2, %v373_v7  ;;  %807 = vmatmul.msk.bf16.vlgmr.msrb.gmra.mxu1 %vm312_vm2, %v373_v7 }
 0x223   :  { %v370_v8 = vpop.f32.mrf.mxu1  ;;  %654 = vmatpush.bf16.msrb.mxu1 %v873_v48 }
 0x227   :  { %655 = vmatpush.bf16.msrb.mxu1 %v865_v59 }
 0x29f   :  { %v416_v19 = vpop.f32.mrf.mxu0  ;;  %v429_v20 = vpop.f32.mrf.mxu1 }
 0x2a0   :  { %v417_v21 = vadd.f32 %v416_v19, %v380_v17  ;;  %v430_v22 = vadd.f32 %v429_v20, %v381_v18 }
 0x2a2   :  { %433 = vst [vmem:[#allocation4] sm:$0xff] %v417_v21  ;;  %v436_v23 = vmul.f32 0.5, %v430_v22 }
 0x2a3   :  { %434 = vst [vmem:[#allocation4 + $0x8] sm:$0xff] %v430_v22 }
 0x2a4   :  { %v437_v24 = vmul.f32 1.442695, %v436_v23  ;;  %694 = dma.vmem_to_hbm [thread:$0]  %s690_s25, 256, %s692_s19, [#allocation5]  }
 0x2a6   :  { %927 = vpow2.f32 %v437_v24 }
 0x2a7   :  { %v418_v25 = vpop.f32.mrf.mxu0  ;;  %v431_v26 = vpop.f32.mrf.mxu1 }
 0x2ac   :  { %v928_v28 = vpop.eup %927 }
 0x2ad   :  { %v439_v29 = vmul.f32 %v928_v28, %v435_v27 }
 0x2af   :  { %v440_v30 = vadd.f32 %v439_v29, %v417_v21 }
 0x2b1   :  { %v441_v31 = vpack.c.bf16 %v440_v30, %v440_v30 }
 0x2b3   :  { %518 = vmatmul.bf16.vlgmr.msra.gmra.mxu0 %v441_v31 }
 0x330   :  { %v519_v35 = vpop.f32.mrf.mxu0 }
 0x331   :  { %v520_v36 = vadd.f32 %v924_v34, %v519_v35 }
 0x333   :  { %v523_v37 = vmax.f32 %v520_v36, 0.0 }
 0x335   :  { %v524_v38 = vpack.c.bf16 %v523_v37, %v523_v37 }
 0x337   :  { %848 = vmatmul.msk.bf16.vlgmr.msra.gmra.mxu1 %vm312_vm2, %v524_v38 }
 0x338   :  { %v521_v39 = vpop.f32.mrf.mxu0 }
 0x3b4   :  { %v553_v51 = vpop.f32.mrf.mxu1 }
 0x3b5   :  { %v554_v52 = vadd.f32 %v553_v51, %v1174_v33  ;;  %v926_v33 = vld [vmem:[%s1326_s18] ss:$0 sm:$0xff] }
 0x3b7   :  { %v561_v53 = vadd.f32 %v925_v50, %v554_v52 }
 0x3b9   :  { %v562_v54 = vmax.f32 %v561_v53, 0.0 }
 0x3bb   :  { %v563_v55 = vpack.c.bf16 %v562_v54, %v562_v54 }
 0x3bc   :  { %v555_v56 = vpop.f32.mrf.mxu1 }
 0x3bd   :  { %857 = vmatmul.msk.bf16.vlgmr.msra.gmra.mxu2 %vm312_vm2, %v563_v55 }
 0x440   :  { %v596_v60 = vpop.f32.mrf.mxu2 }
 0x441   :  { %v597_v61 = vadd.f32 %v926_v33, %v596_v60 }
 0x443   :  { %v600_v62 = vmax.f32 %v597_v61, 0.0 }
 0x445   :  { %v601_v63 = vpack.c.bf16 %v600_v62, %v600_v62 }
 0x447   :  { %874 = vmatmul.msk.bf16.vlgmr.msra.gmra.mxu3 %vm312_vm2, %v601_v63  ;;  %875 = vmatmul.msk.bf16.vlgmr.msrb.gmra.mxu1 %vm312_vm2, %v601_v63 }
 0x448   :  { %v598_v0 = vpop.f32.mrf.mxu2 }
 0x4c4   :  { %v657_v3 = vpop.f32.mrf.mxu1 }
 0x4c5   :  { %v658_v4 = vadd.f32 %v657_v3, %v609_v2 }
 0x4c7   :  { %v662_v5 = vsub.f32 0.0, %v658_v4 }
 0x4c9   :  { %v665_v7 = vmul.f32 1.442695, %v662_v5 }
 0x4ca   :  { %v644_v8 = vpop.f32.mrf.mxu3 }
 0x4cb   :  { %929 = vpow2.f32 %v665_v7  ;;  %v645_v9 = vadd.f32 %v644_v8, %v608_v6 }
 0x4cc   :  { %v659_v10 = vpop.f32.mrf.mxu1 }
 0x4cd   :  { %v661_v11 = vsub.f32 0.0, %v645_v9 }
 0x4cf   :  { %v663_v12 = vmul.f32 1.442695, %v661_v11 }
 0x4d1   :  { %v930_v13 = vpop.eup %929  ;;  %931 = vpow2.f32 %v663_v12 }
 0x4d2   :  { %v668_v14 = vadd.f32 1.0, %v930_v13  ;;  %v646_v15 = vpop.f32.mrf.mxu3 }
 0x4d4   :  { %933 = vrcp.f32 %v668_v14 }
 0x4d7   :  { %v932_v16 = vpop.eup %931 }
 0x4d8   :  { %v667_v17 = vadd.f32 1.0, %v932_v16 }
 0x4da   :  { %v934_v18 = vpop.eup %933  ;;  %935 = vrcp.f32 %v667_v17 }
 0x4db   :  { %672 = vst [vmem:[#allocation2 + $0x8] sm:$0xff] %v934_v18 }
 0x4e0   :  { %v936_v19 = vpop.eup %935 }
 0x4e1   :  { %671 = vst [vmem:[#allocation2] sm:$0xff] %v936_v19 }
 0x4e2   :  { %683 = dma.vmem_to_hbm [thread:$0]  %s679_s22, 256, %s681_s0, [#allocation3]  }
 0x4e3   :  { %985 = dma.done.wait [#allocation3], 256  }
 0x4e4   :  { %986 = vsyncadd [#allocation3], 4294967040 }
 0x4e5   :  { %987 = dma.done.wait [#allocation5], 256  }
 0x4e6   :  { %988 = vsyncadd [#allocation5], 4294967040 }
 0x4e7   :  { %703 = vsyncpa [#allocation3], 1 }
 0x4e8   :  { %704 = vsyncpa [#allocation5], 1 }

</bundles_post_ra>
